<compile_context>
chip_gen: v7x
topology: tpu7x:2x2x1
jax: 0.10.0
libtpu: 0.0.40
codegen_flags: <defaults>
</compile_context>

<pallas_src>
import functools

import jax
import jax.numpy as jnp
from jax.experimental import pallas as pl
from jax.experimental.pallas import tpu as pltpu


def _round_up(x, m):
    return (x + m - 1) // m * m


def _choose_tiles(n):
    """Pick (n_pad, dst_tile, src_tile) with both tiles dividing n_pad.

    Tiles are sized for ~12 MiB of live VMEM (2x adj int8 + 2x H bf16 + f32 acc +
    2x out), well under the 32 MiB scoped limit requested below, so the same config
    fits v5e/v6e/v7x while amortizing the ~0.35 us per-grid-step pipeline overhead.
    """
    if n <= 512:
        n_pad = _round_up(max(n, 128), 128)
        return n_pad, n_pad, n_pad             # single tile on both axes
    if n <= 4096:
        n_pad = _round_up(n, 512)
        return n_pad, 512, n_pad               # >=2 dst tiles (megacore split)
    n_pad = _round_up(n, 4096)
    return n_pad, 1024, 4096                   # ~12 MiB working set, >=4 dst tiles


def _proj_node_tile(n_pad):
    """Projection row tile, decoupled from dst_tile (bigger -> HBM-roofline bound)."""
    for t in (2048, 1024, 512, 256, 128):
        if n_pad % t == 0:
            return t
    return n_pad


# ---------------------------------------------------------------------------
# Kernel 1: per-layer projection  H = X @ W_aug
#   W_aug's last two (in-padding) columns are W @ att_src^T and W @ att_dst^T, so the
#   per-node attention scalars come straight out of the MXU (no VPU/XLU epilogue).
# ---------------------------------------------------------------------------
def proj_kernel(x_ref, w_ref, h_ref, as_ref, ad_ref, *, fout):
    # bf16 MXU operands, f32 accumulation.
    h = jnp.dot(x_ref[...], w_ref[...], preferred_element_type=jnp.float32)
    as_ref[...] = h[:, fout:fout + 1]        # a_src  (f32, per node)
    ad_ref[...] = h[:, fout + 1:fout + 2]    # a_dst  (f32, per node)
    h_ref[...] = h.astype(jnp.bfloat16)


def gat_project(x, w_aug, *, fout, node_tile):
    n_pad, fin_p = x.shape
    fout_p = w_aug.shape[1]
    grid = (n_pad // node_tile,)
    kernel = functools.partial(proj_kernel, fout=fout)
    return pl.pallas_call(
        kernel,
        out_shape=(
            jax.ShapeDtypeStruct((n_pad, fout_p), jnp.bfloat16),  # H (+2 aux cols)
            jax.ShapeDtypeStruct((n_pad, 1), jnp.float32),        # a_src (col)
            jax.ShapeDtypeStruct((n_pad, 1), jnp.float32),        # a_dst (col)
        ),
        grid=grid,
        in_specs=[
            pl.BlockSpec((node_tile, fin_p), lambda i: (i, 0)),
            pl.BlockSpec((fin_p, fout_p), lambda i: (0, 0)),
        ],
        out_specs=(
            pl.BlockSpec((node_tile, fout_p), lambda i: (i, 0)),
            pl.BlockSpec((node_tile, 1), lambda i: (i, 0)),
            pl.BlockSpec((node_tile, 1), lambda i: (i, 0)),
        ),
        compiler_params=pltpu.CompilerParams(dimension_semantics=("parallel",)),
    )(x, w_aug)


# ---------------------------------------------------------------------------
# Kernel 2: tiled attention + aggregation with online masked softmax
#   grid = (dst_tiles [parallel], src_tiles [arbitrary/reduction])
#   tile_nnz (scalar prefetch, SMEM) gates the per-tile work for block sparsity.
# ---------------------------------------------------------------------------
def attn_kernel(nnz_ref, a_d_ref, a_s_row_ref, adj_ref, h_ref, b_ref, o_ref,
                m_sc, l_sc, acc_sc, *, negative_slope, apply_relu):
    di = pl.program_id(0)
    si = pl.program_id(1)

    @pl.when(si == 0)
    def _():
        m_sc[...] = jnp.full_like(m_sc, -1e30)
        l_sc[...] = jnp.zeros_like(l_sc)
        acc_sc[...] = jnp.zeros_like(acc_sc)

    # Block-sparse skip: tiles without edges contribute nothing to the softmax or the
    # accumulator, so all VPU/EUP/MXU work is skipped for them.
    @pl.when(nnz_ref[di, si] > 0)
    def _():
        cnt = adj_ref[...].astype(jnp.float32)          # (dt, st) edge multiplicities
        # scores[i, j] = leaky_relu(a_dst[i] + a_src[j])   (edge j -> i), f32 VPU math
        s = a_d_ref[...] + a_s_row_ref[...]             # (dt,1)+(1,st) -> (dt,st)
        s = jnp.where(s > 0, s, negative_slope * s)
        s = jnp.where(cnt > 0.0, s, -1e30)              # mask non-edges

        # online softmax update (flash-style)
        m_prev = m_sc[...]
        m_new = jnp.maximum(m_prev, jnp.max(s, axis=-1, keepdims=True))
        corr = jnp.exp(m_prev - m_new)
        # weight by edge multiplicity so duplicate (src,dst) pairs match PyG's scatter
        # softmax; cnt==0 lanes are already exactly zero (no second select needed).
        p = cnt * jnp.exp(s - m_new)
        l_sc[...] = corr * l_sc[...] + jnp.sum(p, axis=-1, keepdims=True)
        acc_sc[...] = corr * acc_sc[...] + jnp.dot(
            p.astype(jnp.bfloat16), h_ref[...], preferred_element_type=jnp.float32)
        m_sc[...] = m_new

    @pl.when(si == pl.num_programs(1) - 1)
    def _():
        # exact reciprocal: once per dst row per layer, approx saves nothing here.
        inv = pl.reciprocal(jnp.maximum(l_sc[...], 1e-16))
        # rows with no incoming edges: acc == 0, output == bias (matches PyG)
        out = acc_sc[...] * inv + b_ref[...]
        if apply_relu:
            out = jnp.maximum(out, 0.0)
        o_ref[...] = out.astype(o_ref.dtype)


def gat_aggregate(tile_nnz, a_dst, a_src_row, adj, h, bias, *, dst_tile, src_tile,
                  apply_relu, out_dtype):
    n_pad = adj.shape[0]
    fout_p = h.shape[1]
    grid = (n_pad // dst_tile, n_pad // src_tile)
    kernel = functools.partial(attn_kernel, negative_slope=0.2,
                               apply_relu=apply_relu)
    return pl.pallas_call(
        kernel,
        out_shape=jax.ShapeDtypeStruct((n_pad, fout_p), out_dtype),
        grid_spec=pltpu.PrefetchScalarGridSpec(
            num_scalar_prefetch=1,     # tile_nnz lands in SMEM ahead of the grid
            grid=grid,
            in_specs=[
                pl.BlockSpec((dst_tile, 1), lambda di, si, nnz: (di, 0)),           # a_dst
                pl.BlockSpec((1, src_tile), lambda di, si, nnz: (0, si)),           # a_src row
                pl.BlockSpec((dst_tile, src_tile), lambda di, si, nnz: (di, si)),   # adj int8
                pl.BlockSpec((src_tile, fout_p), lambda di, si, nnz: (si, 0)),      # H bf16
                pl.BlockSpec((1, fout_p), lambda di, si, nnz: (0, 0)),              # bias
            ],
            out_specs=pl.BlockSpec((dst_tile, fout_p), lambda di, si, nnz: (di, 0)),
            scratch_shapes=[
                pltpu.VMEM((dst_tile, 1), jnp.float32),       # running max
                pltpu.VMEM((dst_tile, 1), jnp.float32),       # running sum
                pltpu.VMEM((dst_tile, fout_p), jnp.float32),  # accumulator
            ]),
        compiler_params=pltpu.CompilerParams(
            dimension_semantics=("parallel", "arbitrary"),
            vmem_limit_bytes=32 * 1024 * 1024),
    )(tile_nnz, a_dst, a_src_row, adj, h, bias)


# ---------------------------------------------------------------------------
# Parameters & forward
# ---------------------------------------------------------------------------
def init_gatconv_params(key, fin, fout):
    k1, k2, k3 = jax.random.split(key, 3)
    # glorot-style deterministic init (synthetic weights, not a checkpoint).
    limit_w = (6.0 / (fin + fout)) ** 0.5
    w = jax.random.uniform(k1, (fin, fout), jnp.float32, -limit_w, limit_w)
    limit_a = (6.0 / (1 + fout)) ** 0.5
    att_src = jax.random.uniform(k2, (1, fout), jnp.float32, -limit_a, limit_a)
    att_dst = jax.random.uniform(k3, (1, fout), jnp.float32, -limit_a, limit_a)
    bias = jnp.zeros((1, fout), jnp.float32)
    return dict(w=w, att_src=att_src, att_dst=att_dst, bias=bias)


def _pad2(a, rows, cols):
    return jnp.pad(a, ((0, rows - a.shape[0]), (0, cols - a.shape[1])))


def gat_forward(x, edge_index, edge_weight, params):
    # edge_weight intentionally ignored (GATConv with edge_dim=None ignores edge_attr).
    del edge_weight
    n, fin0 = x.shape
    n_pad, dst_tile, src_tile = _choose_tiles(n)
    node_tile = _proj_node_tile(n_pad)

    src, dst = edge_index[0], edge_index[1]
    # adj[i, j] = multiplicity of edge j -> i (int8: 4x smaller HBM stream than f32).
    adj = jnp.zeros((n_pad, n_pad), jnp.int8).at[dst, src].add(1)

    # Per-(dst_tile, src_tile) occupancy flags (shared by all layers) -> scalar prefetch.
    n_dst_t, n_src_t = n_pad // dst_tile, n_pad // src_tile
    tile_nnz = jnp.any(
        adj.reshape(n_dst_t, dst_tile, n_src_t, src_tile) != 0,
        axis=(1, 3)).astype(jnp.int32)

    # bf16 activations end-to-end (projection consumes bf16 MXU operands anyway).
    h = _pad2(x, n_pad, _round_up(fin0, 128)).astype(jnp.bfloat16)
    out_channels = params[-1]["w"].shape[1]

    for li, p in enumerate(params):
        last = li == len(params) - 1
        fin, fout = p["w"].shape
        fin_p = h.shape[1]                      # current padded activation width
        fout_p = _round_up(fout + 2, 128)       # +2 aux columns live in the padding

        # Fold the attention dot products into the projection matmul:
        #   W_aug = [W | W @ att_src^T | W @ att_dst^T]
        w_aug = jnp.concatenate(
            [p["w"], p["w"] @ p["att_src"].T, p["w"] @ p["att_dst"].T], axis=1)
        w_aug = _pad2(w_aug, fin_p, fout_p).astype(jnp.bfloat16)
        bias = _pad2(p["bias"], 1, fout_p)

        # 1) projection: H = X @ W_aug (computed once per layer) + attention scalars
        h_proj, a_src_col, a_dst_col = gat_project(
            h, w_aug, fout=fout, node_tile=node_tile)

        # lane-major row form for the src scalars (avoids per-tile XLU transpose)
        a_src_row = jnp.transpose(a_src_col)    # (1, n_pad), tiny XLA op

        # 2) masked online-softmax attention + aggregation (+ bias, + ReLU if hidden).
        #    Hidden layers write bf16 activations; the final layer stays f32.
        h = gat_aggregate(tile_nnz, a_dst_col, a_src_row, adj, h_proj, bias,
                          dst_tile=dst_tile, src_tile=src_tile,
                          apply_relu=not last,
                          out_dtype=jnp.float32 if last else jnp.bfloat16)
        # F.dropout(..., training=False) is identity in eval mode.

    return h[:n, :out_channels]


if __name__ == "__main__":
    key = jax.random.PRNGKey(0)

    N = 32                 # number of nodes
    in_channels = 16
    hidden_channels = 32
    out_channels = 8
    num_layers = 3
    num_edges = 64

    k_x, k_e1, k_e2, k_w, k_p = jax.random.split(key, 5)
    x = jax.random.normal(k_x, (N, in_channels), jnp.float32)
    edge_index = jnp.stack([
        jax.random.randint(k_e1, (num_edges,), 0, N),
        jax.random.randint(k_e2, (num_edges,), 0, N),
    ], axis=0)
    edge_weight = jax.random.uniform(k_w, (num_edges,), jnp.float32)

    dims = [in_channels] + [hidden_channels] * (num_layers - 1) + [out_channels]
    layer_keys = jax.random.split(k_p, num_layers)
    params = [init_gatconv_params(layer_keys[i], dims[i], dims[i + 1])
              for i in range(num_layers)]

    out = gat_forward(x, edge_index, edge_weight, params)
    out = jax.block_until_ready(out)
    assert out.shape == (N, out_channels)
    assert bool(jnp.all(jnp.isfinite(out)))
    print("KERNEL_OK")
</pallas_src>

<mosaic_0001>
module attributes {stable_mosaic.version = 11 : i64} {
  func.func @proj_kernel(%arg0: i32, %arg1: memref<128x128xbf16, #tpu.memory_space<vmem>>, %arg2: memref<128x128xbf16, #tpu.memory_space<vmem>>, %arg3: memref<128x128xbf16, #tpu.memory_space<vmem>>, %arg4: memref<128x1xf32, #tpu.memory_space<vmem>>, %arg5: memref<128x1xf32, #tpu.memory_space<vmem>>) attributes {dimension_semantics = [#tpu.dimension_semantics<parallel>], iteration_bounds = array<i64: 1>, scalar_prefetch = 0 : i64, scratch_operands = 0 : i64, tpu.core_type = #tpu.core_type<tc>, window_params = [{transform_indices = @transform_0, window_bounds = array<i64: 128, 128>}, {pipeline_mode = #tpu.pipeline_mode<synchronous>, transform_indices = @transform_1, window_bounds = array<i64: 128, 128>}, {transform_indices = @transform_2, window_bounds = array<i64: 128, 128>}, {transform_indices = @transform_3, window_bounds = array<i64: 128, 1>}, {transform_indices = @transform_4, window_bounds = array<i64: 128, 1>}]} {
    %c0 = arith.constant 0 : index
    %c0_0 = arith.constant 0 : index
    %0 = vector.load %arg1[%c0, %c0_0] : memref<128x128xbf16, #tpu.memory_space<vmem>>, vector<128x128xbf16>
    %c0_1 = arith.constant 0 : index
    %c0_2 = arith.constant 0 : index
    %1 = vector.load %arg2[%c0_1, %c0_2] : memref<128x128xbf16, #tpu.memory_space<vmem>>, vector<128x128xbf16>
    %cst = arith.constant dense<0.000000e+00> : vector<128x128xf32>
    %2 = tpu.matmul %0, %1, %cst {dimension_numbers = #tpu.dot_dimension_numbers<[1], [0], [0], [1], [0, 0, 1, 1], [], []>} : vector<128x128xbf16>, vector<128x128xbf16>, vector<128x128xf32> -> vector<128x128xf32>
    %3 = vector.extract_strided_slice %2 {offsets = [0, 32], sizes = [128, 1], strides = [1, 1]} : vector<128x128xf32> to vector<128x1xf32>
    %c0_3 = arith.constant 0 : index
    %c0_4 = arith.constant 0 : index
    %4 = vector.load %arg4[%c0_3, %c0_4] : memref<128x1xf32, #tpu.memory_space<vmem>>, vector<128x1xf32>
    tpu.vector_store %arg4[%c0_3, %c0_4], %3 {strides = array<i32>} : memref<128x1xf32, #tpu.memory_space<vmem>>, vector<128x1xf32>,
    %5 = vector.extract_strided_slice %2 {offsets = [0, 33], sizes = [128, 1], strides = [1, 1]} : vector<128x128xf32> to vector<128x1xf32>
    %c0_5 = arith.constant 0 : index
    %c0_6 = arith.constant 0 : index
    %6 = vector.load %arg5[%c0_5, %c0_6] : memref<128x1xf32, #tpu.memory_space<vmem>>, vector<128x1xf32>
    tpu.vector_store %arg5[%c0_5, %c0_6], %5 {strides = array<i32>} : memref<128x1xf32, #tpu.memory_space<vmem>>, vector<128x1xf32>,
    %7 = arith.truncf %2 : vector<128x128xf32> to vector<128x128xbf16>
    %c0_7 = arith.constant 0 : index
    %c0_8 = arith.constant 0 : index
    %8 = vector.load %arg3[%c0_7, %c0_8] : memref<128x128xbf16, #tpu.memory_space<vmem>>, vector<128x128xbf16>
    tpu.vector_store %arg3[%c0_7, %c0_8], %7 {strides = array<i32>} : memref<128x128xbf16, #tpu.memory_space<vmem>>, vector<128x128xbf16>,
    return
  }
  func.func @transform_0(%arg0: i32) -> (i32, i32) {
    %c0_i32 = arith.constant 0 : i32
    %c0_i32_0 = arith.constant 0 : i32
    return %arg0, %c0_i32 : i32, i32
  }
  func.func @transform_1(%arg0: i32) -> (i32, i32) {
    %c0_i32 = arith.constant 0 : i32
    %c0_i32_0 = arith.constant 0 : i32
    %c0_i32_1 = arith.constant 0 : i32
    return %c0_i32, %c0_i32_0 : i32, i32
  }
  func.func @transform_2(%arg0: i32) -> (i32, i32) {
    %c0_i32 = arith.constant 0 : i32
    %c0_i32_0 = arith.constant 0 : i32
    return %arg0, %c0_i32 : i32, i32
  }
  func.func @transform_3(%arg0: i32) -> (i32, i32) {
    %c0_i32 = arith.constant 0 : i32
    %c0_i32_0 = arith.constant 0 : i32
    return %arg0, %c0_i32 : i32, i32
  }
  func.func @transform_4(%arg0: i32) -> (i32, i32) {
    %c0_i32 = arith.constant 0 : i32
    %c0_i32_0 = arith.constant 0 : i32
    return %arg0, %c0_i32 : i32, i32
  }
}

</mosaic_0001>

<bundles_post_ra>
// kernel: tpu_custom_call.1
= control target key start
LH: loop header
LB: loop body
LE: loop exit
PB: predicated region body
PF: predicated region fallthrough
CT: control target
= control target key end

     0   :  { %10 = vsyncpa [#allocation3], 0  ;;  %s1011_s0 = inlined_call_operand.hbm [shape: bf16[128,128], index: 0, kind: input, shape index: {}]   ;;  %s1012_s1 = inlined_call_operand.hbm [shape: bf16[128,128], index: 1, kind: input, shape index: {}]   ;;  %s1013_s2 = inlined_call_operand.hbm [shape: bf16[128,128], index: 2, kind: output, shape index: {0}]   ;;  %s1014_s3 = inlined_call_operand.vmem [shape: f32[128,1], index: 3, kind: output, shape index: {1}]   ;;  %s1015_s4 = inlined_call_operand.vmem [shape: f32[128,1], index: 4, kind: output, shape index: {2}]  }
   0x1   :  { %11 = vsyncpa [#allocation6], 0 }
   0x2   :  { %12 = vsyncpa [#allocation4], 0  ;;  %s774_s15 = smov [#allocation2]   ;;  %s702_s19 = scalar_lea.hbm %s1011_s0, 1024 }
   0x3   :  { %s18_s16 = sshll.u32 %s774_s15, 4  ;;  %p703_p0 = scmp.ne.s32.totalorder %s1011_s0, %s702_s19  ;;  %s19_s16 = int_to_ptr.vmem [resolvable:$true] %s18_s16 }
   0x4   :  { %p706_p1 = scmp.lt.u32.totalorder %s702_s19, %s1011_s0 }
   0x6   :  { %p708_p2 = pnand %p706_p1, %p703_p0 }
   0x8   :  { %711 = shalt.err (!%p708_p2)
}
   0x9   :  { %s712_s24 = scalar_lea.vmem %s19_s16, 1024  ;;  %p717_p4 = scmp.lt.s32.totalorder %s19_s16, %s19_s16 }
   0xa   :  { %p713_p3 = scmp.ne.s32.totalorder %s19_s16, %s712_s24  ;;  %p718_p5 = scmp.lt.s32.totalorder %s712_s24, %s712_s24 }
   0xc   :  { %p719_p6 = por %p718_p5, %p717_p4 }
   0xe   :  { %p720_p7 = pnand %p719_p6, %p713_p3 }
  0x10   :  { %723 = shalt.err (!%p720_p7)
}
  0x11   :  { %s775_s25 = smov 64   ;;  %s776_s26 = smov 4  }
  0x12   :  { %24 = dma.hbm_to_vmem [thread:$0]  %s1011_s0, 1024, %s19_s16, [#allocation3], %s775_s25, %s775_s25, %s776_s26  }
  0x13   :  { %s777_s29 = smov [#allocation5]   ;;  %s724_s7 = scalar_lea.hbm %s1012_s1, 1024 }
  0x14   :  { %s30_s30 = sshll.u32 %s777_s29, 4  ;;  %p725_p8 = scmp.ne.s32.totalorder %s1012_s1, %s724_s7  ;;  %s31_s30 = int_to_ptr.vmem [resolvable:$true] %s30_s30 }
  0x15   :  { %p728_p9 = scmp.lt.u32.totalorder %s724_s7, %s1012_s1 }
  0x17   :  { %p730_p10 = pnand %p728_p9, %p725_p8 }
  0x19   :  { %733 = shalt.err (!%p730_p10)
}
  0x1a   :  { %s734_s12 = scalar_lea.vmem %s31_s30, 1024  ;;  %p739_p12 = scmp.lt.s32.totalorder %s31_s30, %s31_s30 }
  0x1b   :  { %p735_p11 = scmp.ne.s32.totalorder %s31_s30, %s734_s12  ;;  %p740_p13 = scmp.lt.s32.totalorder %s734_s12, %s734_s12 }
  0x1d   :  { %p741_p0 = por %p740_p13, %p739_p12 }
  0x1f   :  { %p742_p1 = pnand %p741_p0, %p735_p11 }
  0x21   :  { %745 = shalt.err (!%p742_p1)
}
  0x22   :  { %36 = dma.hbm_to_vmem [thread:$0]  %s1012_s1, 1024, %s31_s30, [#allocation6], %s775_s25, %s775_s25, %s776_s26  }
  0x23   :  { %768 = dma.done.wait [#allocation3], 1024  }
  0x24   :  { %769 = vsyncadd [#allocation3], 4294966272 }
  0x25   :  { %770 = dma.done.wait [#allocation6], 1024  }
  0x26   :  { %771 = vsyncadd [#allocation6], 4294966272  ;;  %v686_v0 = vld [vmem:[#allocation5] sm:$0xff]   ;;  %v687_v1 = vld [vmem:[#allocation5 + $0x8] sm:$0xff]   ;;  %s778_s1 = smov 96   ;;  %s779_s14 = smov 95  }
  0x27   :  { %631 = vmatprep.subr.bf16.mxu0 %v686_v0  ;;  %663 = vmatprep.subr.bf16.mxu1 %v686_v0  ;;  %v688_v2 = vld [vmem:[#allocation5 + $0x10] sm:$0xff]   ;;  %v689_v3 = vld [vmem:[#allocation5 + $0x18] sm:$0xff]   ;;  %v694_v4 = vld [vmem:[#allocation2] sm:$0xff]   ;;  %s780_s15 = smov [#allocation7]  }
  0x28   :  { %632 = vmatpush3.bf16.msra.mxu0 %v686_v0  ;;  %671 = vmatpush3.bf16.msra.mxu1 %v686_v0  ;;  %v695_v5 = vld [vmem:[#allocation2 + $0x20] sm:$0xff]   ;;  %v691_v7 = vld [vmem:[#allocation5 + $0x28] sm:$0xff]   ;;  %v692_v8 = vld [vmem:[#allocation5 + $0x30] sm:$0xff]   ;;  %s499_s16 = sshll.u32 %s780_s15, 4  ;;  %s500_s16 = int_to_ptr.vmem [resolvable:$true] %s499_s16 }
  0x29   :  { %633 = vmatprep.subr.bf16.mxu0 %v687_v1  ;;  %664 = vmatprep.subr.bf16.mxu1 %v687_v1  ;;  %v690_v6 = vld [vmem:[#allocation5 + $0x20] sm:$0xff]   ;;  %v693_v9 = vld [vmem:[#allocation5 + $0x38] sm:$0xff]   ;;  %v696_v10 = vld [vmem:[#allocation2 + $0x8] sm:$0xff]   ;;  %s746_s17 = scalar_lea.vmem %s500_s16, 1024  ;;  %p751_p3 = scmp.lt.s32.totalorder %s500_s16, %s500_s16 }
  0x2a   :  { %647 = vmatprep.mubr.bf16.mxu0 %v694_v4  ;;  %655 = vmatprep.mubr.bf16.mxu1 %v695_v5  ;;  %v697_v11 = vld [vmem:[#allocation2 + $0x28] sm:$0xff]   ;;  %v698_v12 = vld [vmem:[#allocation2 + $0x10] sm:$0xff]   ;;  %v699_v14 = vld [vmem:[#allocation2 + $0x18] sm:$0xff]   ;;  %p747_p2 = scmp.ne.s32.totalorder %s500_s16, %s746_s17  ;;  %p752_p4 = scmp.lt.s32.totalorder %s746_s17, %s746_s17 }
  0x2b   :  { %v700_v13 = vld [vmem:[#allocation2 + $0x30] sm:$0xff]   ;;  %v701_v15 = vld [vmem:[#allocation2 + $0x38] sm:$0xff]  }
  0x2c   :  { %634 = vmatpush3.bf16.msra.mxu0 %v687_v1  ;;  %672 = vmatpush3.bf16.msra.mxu1 %v687_v1  ;;  %p753_p5 = por %p752_p4, %p751_p3 }
  0x2d   :  { %635 = vmatprep.subr.bf16.mxu0 %v688_v2  ;;  %665 = vmatprep.subr.bf16.mxu1 %v688_v2 }
  0x2e   :  { %p754_p6 = pnand %p753_p5, %p747_p2 }
  0x30   :  { %636 = vmatpush3.bf16.msra.mxu0 %v688_v2  ;;  %673 = vmatpush3.bf16.msra.mxu1 %v688_v2 }
  0x31   :  { %637 = vmatprep.subr.bf16.mxu0 %v689_v3  ;;  %666 = vmatprep.subr.bf16.mxu1 %v689_v3 }
  0x34   :  { %638 = vmatpush3.bf16.msra.mxu0 %v689_v3  ;;  %674 = vmatpush3.bf16.msra.mxu1 %v689_v3 }
  0x35   :  { %639 = vmatprep.subr.bf16.mxu0 %v690_v6  ;;  %667 = vmatprep.subr.bf16.mxu1 %v690_v6 }
  0x38   :  { %640 = vmatpush3.bf16.msra.mxu0 %v690_v6  ;;  %675 = vmatpush3.bf16.msra.mxu1 %v690_v6 }
  0x39   :  { %641 = vmatprep.subr.bf16.mxu0 %v691_v7  ;;  %668 = vmatprep.subr.bf16.mxu1 %v691_v7 }
  0x3c   :  { %642 = vmatpush3.bf16.msra.mxu0 %v691_v7  ;;  %676 = vmatpush3.bf16.msra.mxu1 %v691_v7 }
  0x3d   :  { %643 = vmatprep.subr.bf16.mxu0 %v692_v8  ;;  %669 = vmatprep.subr.bf16.mxu1 %v692_v8 }
  0x40   :  { %644 = vmatpush3.bf16.msra.mxu0 %v692_v8  ;;  %677 = vmatpush3.bf16.msra.mxu1 %v692_v8 }
  0x41   :  { %645 = vmatprep.subr.bf16.mxu0 %v693_v9  ;;  %670 = vmatprep.subr.bf16.mxu1 %v693_v9 }
  0x44   :  { %646 = vmatpush3.bf16.msra.mxu0 %v693_v9  ;;  %678 = vmatpush3.bf16.msra.mxu1 %v693_v9 }
  0x47   :  { %648 = vmatmul.mubr.bf16.vlgmr.msra.gmra.mrb[0].mxu0 %v696_v10  ;;  %656 = vmatmul.mubr.bf16.vlgmr.msra.gmra.mrb[0].mxu1 %v697_v11 }
  0x48   :  { %651 = vmatprep.mubr.bf16.mxu0 %v698_v12  ;;  %659 = vmatprep.mubr.bf16.mxu1 %v700_v13 }
  0x4f   :  { %652 = vmatmul.mubr.bf16.gmra.mrb[4].mxu0 %v699_v14  ;;  %660 = vmatmul.mubr.bf16.gmra.mrb[4].mxu1 %v701_v15 }
 0x11a   :  { %v649_v16 = vpop.f32.mrb[0].mxu0  ;;  %v657_v17 = vpop.f32.mrb[0].mxu1 }
 0x11b   :  { %305 = vrot.lane.b32.xlu0 %v657_v17, %s778_s1  ;;  %v238_v18 = vpop.f32.mrb[1].mxu1  ;;  %289 = vrot.lane.b32.xlu1 %v649_v16, %s778_s1  ;;  %v206_v19 = vpop.f32.mrb[1].mxu0 }
 0x11c   :  { %v650_v20 = vpop.f32.mrb[2].mxu0  ;;  %v658_v21 = vpop.f32.mrb[2].mxu1 }
 0x11d   :  { %v576_v22 = vpack.c.bf16 %v650_v20, %v649_v16  ;;  %v596_v23 = vpack.c.bf16 %v658_v21, %v657_v17  ;;  %v209_v24 = vpop.f32.mrb[3].mxu0  ;;  %v241_v25 = vpop.f32.mrb[3].mxu1 }
 0x11e   :  { %v571_v26 = vpack.c.bf16 %v209_v24, %v206_v19  ;;  %v591_v27 = vpack.c.bf16 %v241_v25, %v238_v18 }
 0x11f   :  { %608 = vst [vmem:[#allocation7 + $0x8] sm:$0xff] %v576_v22   ;;  %612 = vst [vmem:[#allocation7 + $0x28] sm:$0xff] %v596_v23   ;;  %354 = vrot.lane.b32.xlu0 %v649_v16, %s779_s14  ;;  %291 = vrot.lane.b32.xlu1 %v650_v20, %s778_s1 }
 0x120   :  { %572 = vst [vmem:[#allocation7] sm:$0xff] %v571_v26   ;;  %611 = vst [vmem:[#allocation7 + $0x20] sm:$0xff] %v591_v27  }
 0x122   :  { %v653_v28 = vpop.f32.mrb[4].mxu0  ;;  %v661_v29 = vpop.f32.mrb[4].mxu1 }
 0x123   :  { %370 = vrot.lane.b32.xlu0 %v657_v17, %s779_s14  ;;  %307 = vrot.lane.b32.xlu1 %v658_v21, %s778_s1  ;;  %v222_v30 = vpop.f32.mrb[5].mxu0  ;;  %v254_v31 = vpop.f32.mrb[5].mxu1 }
 0x124   :  { %v654_v32 = vpop.f32.mrb[6].mxu0  ;;  %v662_v33 = vpop.f32.mrb[6].mxu1 }
 0x125   :  { %v586_v34 = vpack.c.bf16 %v654_v32, %v653_v28  ;;  %v225_v35 = vpop.f32.mrb[7].mxu0  ;;  %v606_v36 = vpack.c.bf16 %v662_v33, %v661_v29  ;;  %v257_v37 = vpop.f32.mrb[7].mxu1 }
 0x126   :  { %v581_v38 = vpack.c.bf16 %v225_v35, %v222_v30  ;;  %v601_v39 = vpack.c.bf16 %v257_v37, %v254_v31 }
 0x127   :  { %285 = vrot.lane.b32.xlu0 %v206_v19, %s778_s1  ;;  %356 = vrot.lane.b32.xlu1 %v650_v20, %s779_s14  ;;  %610 = vst [vmem:[#allocation7 + $0x18] sm:$0xff] %v586_v34   ;;  %614 = vst [vmem:[#allocation7 + $0x38] sm:$0xff] %v606_v36  }
 0x128   :  { %609 = vst [vmem:[#allocation7 + $0x10] sm:$0xff] %v581_v38   ;;  %613 = vst [vmem:[#allocation7 + $0x30] sm:$0xff] %v601_v39  }
 0x12b   :  { %301 = vrot.lane.b32.xlu0 %v238_v18, %s778_s1  ;;  %372 = vrot.lane.b32.xlu1 %v658_v21, %s779_s14 }
 0x12f   :  { %350 = vrot.lane.b32.xlu0 %v206_v19, %s779_s14  ;;  %303 = vrot.lane.b32.xlu1 %v241_v25, %s778_s1 }
 0x133   :  { %366 = vrot.lane.b32.xlu0 %v238_v18, %s779_s14  ;;  %352 = vrot.lane.b32.xlu1 %v209_v24, %s779_s14 }
 0x137   :  { %368 = vrot.lane.b32.xlu1 %v241_v25, %s779_s14  ;;  %287 = vrot.lane.b32.xlu0 %v209_v24, %s778_s1 }
 0x13b   :  { %297 = vrot.lane.b32.xlu0 %v653_v28, %s778_s1  ;;  %299 = vrot.lane.b32.xlu1 %v654_v32, %s778_s1 }
 0x13f   :  { %313 = vrot.lane.b32.xlu0 %v661_v29, %s778_s1  ;;  %315 = vrot.lane.b32.xlu1 %v662_v33, %s778_s1 }
 0x143   :  { %362 = vrot.lane.b32.xlu0 %v653_v28, %s779_s14  ;;  %364 = vrot.lane.b32.xlu1 %v654_v32, %s779_s14 }
 0x147   :  { %293 = vrot.lane.b32.xlu0 %v222_v30, %s778_s1  ;;  %295 = vrot.lane.b32.xlu1 %v225_v35, %s778_s1 }
 0x148   :  { %757 = shalt.err (!%p754_p6)
}
 0x149   :  { %s758_s20 = scalar_lea.hbm %s1013_s2, 1024 }
 0x14a   :  { %p759_p7 = scmp.ne.s32.totalorder %s1013_s2, %s758_s20  ;;  %p762_p8 = scmp.lt.u32.totalorder %s758_s20, %s1013_s2 }
 0x14c   :  { %p764_p9 = pnand %p762_p8, %p759_p7 }
 0x14e   :  { %767 = shalt.err (!%p764_p9)
}
 0x14f   :  { %505 = dma.vmem_to_hbm [thread:$0]  %s500_s16, 1024, %s1013_s2, [#allocation4], %s775_s25, %s775_s25, %s776_s26   ;;  %vm333_vm0 = vcmask 7168  }
 0x150   :  { %309 = vrot.lane.b32.xlu0 %v254_v31, %s778_s1  ;;  %311 = vrot.lane.b32.xlu1 %v257_v37, %s778_s1 }
 0x154   :  { %358 = vrot.lane.b32.xlu0 %v222_v30, %s779_s14  ;;  %360 = vrot.lane.b32.xlu1 %v225_v35, %s779_s14 }
 0x158   :  { %374 = vrot.lane.b32.xlu0 %v254_v31, %s779_s14  ;;  %376 = vrot.lane.b32.xlu1 %v257_v37, %s779_s14 }
 0x15c   :  { %378 = vrot.lane.b32.xlu0 %v661_v29, %s779_s14  ;;  %380 = vrot.lane.b32.xlu1 %v662_v33, %s779_s14 }
 0x18d   :  { %v306_v40 = vpop.permute.xlu0 %305  ;;  %v290_v41 = vpop.permute.xlu1 %289 }
 0x18e   :  { %344 = vst.msk [vmem:[%s1014_s3 + $0x50] sm:$0xff] %vm333_vm0, %v306_v40  ;;  %336 = vst.msk [vmem:[%s1014_s3 + $0x10] sm:$0xff] %vm333_vm0, %v290_v41 }
 0x191   :  { %v355_v42 = vpop.permute.xlu0 %354  ;;  %v292_v43 = vpop.permute.xlu1 %291 }
 0x192   :  { %400 = vst.msk [vmem:[%s1015_s4 + $0x10] sm:$0xff] %vm333_vm0, %v355_v42  ;;  %337 = vst.msk [vmem:[%s1014_s3 + $0x18] sm:$0xff] %vm333_vm0, %v292_v43 }
 0x195   :  { %v371_v44 = vpop.permute.xlu0 %370  ;;  %v308_v45 = vpop.permute.xlu1 %307 }
 0x196   :  { %408 = vst.msk [vmem:[%s1015_s4 + $0x50] sm:$0xff] %vm333_vm0, %v371_v44  ;;  %345 = vst.msk [vmem:[%s1014_s3 + $0x58] sm:$0xff] %vm333_vm0, %v308_v45 }
 0x199   :  { %v286_v46 = vpop.permute.xlu0 %285  ;;  %v357_v47 = vpop.permute.xlu1 %356 }
 0x19a   :  { %334 = vst.msk [vmem:[%s1014_s3] sm:$0xff] %vm333_vm0, %v286_v46  ;;  %401 = vst.msk [vmem:[%s1015_s4 + $0x18] sm:$0xff] %vm333_vm0, %v357_v47 }
 0x19d   :  { %v302_v48 = vpop.permute.xlu0 %301  ;;  %v373_v49 = vpop.permute.xlu1 %372 }
 0x19e   :  { %342 = vst.msk [vmem:[%s1014_s3 + $0x40] sm:$0xff] %vm333_vm0, %v302_v48  ;;  %409 = vst.msk [vmem:[%s1015_s4 + $0x58] sm:$0xff] %vm333_vm0, %v373_v49 }
 0x1a1   :  { %v351_v50 = vpop.permute.xlu0 %350  ;;  %v304_v51 = vpop.permute.xlu1 %303 }
 0x1a2   :  { %398 = vst.msk [vmem:[%s1015_s4] sm:$0xff] %vm333_vm0, %v351_v50  ;;  %343 = vst.msk [vmem:[%s1014_s3 + $0x48] sm:$0xff] %vm333_vm0, %v304_v51 }
 0x1a5   :  { %v367_v52 = vpop.permute.xlu0 %366  ;;  %v353_v53 = vpop.permute.xlu1 %352 }
 0x1a6   :  { %406 = vst.msk [vmem:[%s1015_s4 + $0x40] sm:$0xff] %vm333_vm0, %v367_v52  ;;  %399 = vst.msk [vmem:[%s1015_s4 + $0x8] sm:$0xff] %vm333_vm0, %v353_v53 }
 0x1a9   :  { %v369_v54 = vpop.permute.xlu1 %368  ;;  %v288_v55 = vpop.permute.xlu0 %287 }
 0x1aa   :  { %407 = vst.msk [vmem:[%s1015_s4 + $0x48] sm:$0xff] %vm333_vm0, %v369_v54  ;;  %335 = vst.msk [vmem:[%s1014_s3 + $0x8] sm:$0xff] %vm333_vm0, %v288_v55 }
 0x1ad   :  { %v298_v56 = vpop.permute.xlu0 %297  ;;  %v300_v57 = vpop.permute.xlu1 %299 }
 0x1ae   :  { %340 = vst.msk [vmem:[%s1014_s3 + $0x30] sm:$0xff] %vm333_vm0, %v298_v56  ;;  %341 = vst.msk [vmem:[%s1014_s3 + $0x38] sm:$0xff] %vm333_vm0, %v300_v57 }
 0x1b1   :  { %v314_v58 = vpop.permute.xlu0 %313  ;;  %v316_v59 = vpop.permute.xlu1 %315 }
 0x1b2   :  { %348 = vst.msk [vmem:[%s1014_s3 + $0x70] sm:$0xff] %vm333_vm0, %v314_v58  ;;  %349 = vst.msk [vmem:[%s1014_s3 + $0x78] sm:$0xff] %vm333_vm0, %v316_v59 }
 0x1b5   :  { %v363_v60 = vpop.permute.xlu0 %362  ;;  %v365_v61 = vpop.permute.xlu1 %364 }
 0x1b6   :  { %404 = vst.msk [vmem:[%s1015_s4 + $0x30] sm:$0xff] %vm333_vm0, %v363_v60  ;;  %405 = vst.msk [vmem:[%s1015_s4 + $0x38] sm:$0xff] %vm333_vm0, %v365_v61 }
 0x1b9   :  { %v294_v62 = vpop.permute.xlu0 %293  ;;  %v296_v63 = vpop.permute.xlu1 %295 }
 0x1ba   :  { %338 = vst.msk [vmem:[%s1014_s3 + $0x20] sm:$0xff] %vm333_vm0, %v294_v62  ;;  %339 = vst.msk [vmem:[%s1014_s3 + $0x28] sm:$0xff] %vm333_vm0, %v296_v63 }
 0x1c2   :  { %v310_v0 = vpop.permute.xlu0 %309  ;;  %v312_v1 = vpop.permute.xlu1 %311 }
 0x1c3   :  { %346 = vst.msk [vmem:[%s1014_s3 + $0x60] sm:$0xff] %vm333_vm0, %v310_v0  ;;  %347 = vst.msk [vmem:[%s1014_s3 + $0x68] sm:$0xff] %vm333_vm0, %v312_v1 }
 0x1c6   :  { %v359_v2 = vpop.permute.xlu0 %358  ;;  %v361_v3 = vpop.permute.xlu1 %360 }
 0x1c7   :  { %402 = vst.msk [vmem:[%s1015_s4 + $0x20] sm:$0xff] %vm333_vm0, %v359_v2  ;;  %403 = vst.msk [vmem:[%s1015_s4 + $0x28] sm:$0xff] %vm333_vm0, %v361_v3 }
 0x1ca   :  { %v375_v4 = vpop.permute.xlu0 %374  ;;  %v377_v5 = vpop.permute.xlu1 %376 }
 0x1cb   :  { %410 = vst.msk [vmem:[%s1015_s4 + $0x60] sm:$0xff] %vm333_vm0, %v375_v4  ;;  %411 = vst.msk [vmem:[%s1015_s4 + $0x68] sm:$0xff] %vm333_vm0, %v377_v5 }
 0x1ce   :  { %v379_v6 = vpop.permute.xlu0 %378  ;;  %v381_v7 = vpop.permute.xlu1 %380 }
 0x1cf   :  { %412 = vst.msk [vmem:[%s1015_s4 + $0x70] sm:$0xff] %vm333_vm0, %v379_v6  ;;  %413 = vst.msk [vmem:[%s1015_s4 + $0x78] sm:$0xff] %vm333_vm0, %v381_v7 }
 0x1d0   :  { %772 = dma.done.wait [#allocation4], 1024  }
 0x1d1   :  { %773 = vsyncadd [#allocation4], 4294966272 }
 0x1d2   :  { %517 = vsyncpa [#allocation3], 1 }
 0x1d3   :  { %518 = vsyncpa [#allocation6], 1 }
 0x1d4   :  { %519 = vsyncpa [#allocation4], 1 }

</bundles_post_ra>
